<compile_context>
chip_gen: v6e
topology: v6e:2x2x1
jax: 0.10.0
libtpu: 0.0.40
codegen_flags: <defaults>
</compile_context>

<pallas_src>
import jax
import jax.numpy as jnp
from jax import lax
from jax.experimental import pallas as pl
from jax.experimental.pallas import tpu as pltpu


# Fixed 3x3 Gaussian of the PyTorch module (same kernel for every channel).
GAUSS_W = (
    (0.0625, 0.125, 0.0625),
    (0.125, 0.25, 0.125),
    (0.0625, 0.125, 0.0625),
)


def _gauss_kernel(x_ref, top_ref, bot_ref, o_ref):
    """Separable 3x3 Gaussian on one (C, TH, W) row tile with 1-row halos.

    x_ref:   (C, TH, W)    main tile (unpadded image rows)
    top_ref: (1, C, 1, W)  the image row just above the tile (zeros at image top)
    bot_ref: (1, C, 1, W)  the image row just below the tile (zeros at image bottom)
    o_ref:   (C, TH, W)
    """
    f32 = jnp.float32
    x = x_ref[...].astype(f32)          # (C, TH, W)
    top = top_ref[0].astype(f32)        # (C, 1, W)
    bot = bot_ref[0].astype(f32)        # (C, 1, W)

    _, th, w = x.shape

    # Lane-edge masks (Conv2d zero padding at image left/right): kill the column that
    # wraps around in the lane rotate. Built once as a (1, W) float mask -> two mask
    # multiplies instead of a full-tile iota + compares + selects.
    lane = lax.broadcasted_iota(jnp.int32, (1, w), 1)
    mask_l = (lane > 0).astype(f32)        # zero at lane 0
    mask_r = (lane < w - 1).astype(f32)    # zero at lane W-1

    def hpass(t):
        # [1, 2, 1] / 4 along lanes; +-1 column shifts via XLU lane rotate.
        left = pltpu.roll(t, shift=1, axis=2) * mask_l        # t[..., j-1]
        right = pltpu.roll(t, shift=w - 1, axis=2) * mask_r    # t[..., j+1] (w-1 == -1 mod w)
        return 0.5 * t + 0.25 * (left + right)

    h = hpass(x)          # (C, TH, W)
    h_top = hpass(top)    # (C, 1, W)
    h_bot = hpass(bot)    # (C, 1, W)

    if th == 1:
        # Degenerate single-row tile: both vertical neighbors are the halo rows.
        o_ref[...] = (0.5 * h + 0.25 * (h_top + h_bot)).astype(o_ref.dtype)
        return

    # Vertical [1, 2, 1] / 4 pass via sublane rotates on the aligned tile (no concat,
    # no offset slices). The rolled tensors wrap at rows 0 / TH-1; those two rows are
    # overwritten below with the halo-corrected values.
    up = pltpu.roll(h, shift=1, axis=1)        # row r <- h[r-1]
    dn = pltpu.roll(h, shift=th - 1, axis=1)   # row r <- h[r+1]
    o_ref[...] = (0.5 * h + 0.25 * (up + dn)).astype(o_ref.dtype)

    # Patch only the two boundary rows (single-row masked stores).
    first = 0.5 * h[:, 0:1, :] + 0.25 * (h_top + h[:, 1:2, :])
    last = 0.5 * h[:, th - 1:th, :] + 0.25 * (h[:, th - 2:th - 1, :] + h_bot)
    o_ref[:, 0:1, :] = first.astype(o_ref.dtype)
    o_ref[:, th - 1:th, :] = last.astype(o_ref.dtype)


def _vmem_capacity_bytes():
    """Per-core VMEM capacity; conservative fallback if the query is unavailable."""
    try:
        info = pltpu.get_tpu_info()
        cap = getattr(info, "vmem_capacity_bytes", None)
        if cap:
            return int(cap)
    except Exception:
        pass
    return 64 * 1024 * 1024  # v7x-sized fallback: safe on every generation


def _pick_tile_h(H, W, C, itemsize, vmem_bytes):
    """Largest multiple-of-8 divisor of H within the per-block VMEM byte budget.

    The byte budget alone sizes the tile (no artificial row cap); when H >= 16 the tile
    is additionally capped at H//2 so the 'parallel' grid has >= 2 steps and both v7x
    TensorCores get work.
    """
    row_bytes = max(1, C * W * itemsize)
    budget = max(1 << 20, vmem_bytes // 16)   # ~4 blocks live (2x in + 2x out) = vmem/4
    cap = min(H, max(8, budget // row_bytes))
    if H >= 16:
        cap = min(cap, H // 2)
    cap = max(8, (cap // 8) * 8)
    th = cap
    while th >= 8:
        if H % th == 0:
            return th
        th -= 8
    return H  # no suitable multiple-of-8 divisor -> single full-height tile


def gauss_filter(x, tile_h=None):
    """Pallas equivalent of GaussFilter.forward: x (3, H, W) -> (3, H, W)."""
    C, H, W = x.shape
    itemsize = jnp.dtype(x.dtype).itemsize
    vmem_bytes = _vmem_capacity_bytes()
    TH = tile_h if tile_h is not None else _pick_tile_h(H, W, C, itemsize, vmem_bytes)
    assert H % TH == 0, "tile_h must divide H"
    n_tiles = H // TH
    assert n_tiles == 1 or TH % 8 == 0, "multi-tile grids need tile_h % 8 == 0"

    # One-row halos per tile, gathered once in the wrapper (tiny strided slice of x).
    # The rows that fall outside the image are already zero -> Conv2d zero padding,
    # and the kernel needs no boundary masking at all.
    zero_row = jnp.zeros((1, C, W), x.dtype)
    if n_tiles > 1:
        above = jnp.swapaxes(x[:, TH - 1:H - 1:TH, :], 0, 1)   # (n-1, C, W): row above tile i>=1
        below = jnp.swapaxes(x[:, TH:H:TH, :], 0, 1)           # (n-1, C, W): row below tile i<=n-2
        top_halo = jnp.concatenate([zero_row, above], axis=0)  # (n, C, W)
        bot_halo = jnp.concatenate([below, zero_row], axis=0)  # (n, C, W)
    else:
        top_halo = zero_row
        bot_halo = zero_row
    top_halo = top_halo[:, :, None, :]   # (n_tiles, C, 1, W)
    bot_halo = bot_halo[:, :, None, :]

    def main_map(i):
        return (0, i, 0)

    def halo_map(i):
        return (i, 0, 0, 0)

    elems = C * H * W
    halo_elems = 2 * n_tiles * C * W
    cost = pl.CostEstimate(
        flops=12 * elems,                                   # separable 3x3 stencil
        transcendentals=0,
        bytes_accessed=(2 * elems + halo_elems) * itemsize,  # x + y + one-row halos
    )

    # Keep the double-buffered working set (~vmem/4) comfortably inside the limit on
    # every generation (128 MiB v5e/v6e, 64 MiB v7x).
    vmem_limit = max(32 * 1024 * 1024, min(vmem_bytes // 2, 64 * 1024 * 1024))

    return pl.pallas_call(
        _gauss_kernel,
        out_shape=jax.ShapeDtypeStruct((C, H, W), x.dtype),
        grid=(n_tiles,),
        in_specs=[
            pl.BlockSpec((C, TH, W), main_map),
            pl.BlockSpec((1, C, 1, W), halo_map),
            pl.BlockSpec((1, C, 1, W), halo_map),
        ],
        out_specs=pl.BlockSpec((C, TH, W), main_map),
        compiler_params=pltpu.CompilerParams(
            dimension_semantics=("parallel",),   # row tiles split across TCs on v7x
            vmem_limit_bytes=vmem_limit,
        ),
        cost_estimate=cost,
    )(x, top_halo, bot_halo)


def _reference(x):
    """Pure-JAX 9-tap reference of the depthwise 3x3 conv (zero padding)."""
    C, H, W = x.shape
    xpad = jnp.pad(x, ((0, 0), (1, 1), (1, 1)))
    acc = jnp.zeros((C, H, W), jnp.float32)
    for di in range(3):
        for dj in range(3):
            acc = acc + GAUSS_W[di][dj] * xpad[:, di:di + H, dj:dj + W]
    return acc.astype(x.dtype)


if __name__ == "__main__":
    key = jax.random.PRNGKey(0)
    # GaussFilter is Conv2d(3, 3, k=3, groups=3): input is (3, H, W).
    # H=16 -> two 8-row tiles: exercises the grid, 1-row halos and boundary patching.
    x = jax.random.normal(key, (3, 16, 128), dtype=jnp.float32)
    y = jax.block_until_ready(gauss_filter(x))
    assert y.shape == x.shape
    assert jnp.allclose(y, _reference(x), atol=1e-5, rtol=1e-5)

    # Single-tile path (no interior halos, only zero-padded edges).
    x2 = jax.random.normal(jax.random.PRNGKey(0), (3, 8, 128), dtype=jnp.float32)
    y2 = jax.block_until_ready(gauss_filter(x2))
    assert jnp.allclose(y2, _reference(x2), atol=1e-5, rtol=1e-5)

    print("KERNEL_OK")
</pallas_src>

<mosaic_0001>
module attributes {stable_mosaic.version = 11 : i64} {
  func.func @_gauss_kernel(%arg0: i32, %arg1: memref<3x8x128xf32, #tpu.memory_space<vmem>>, %arg2: memref<1x3x1x128xf32, #tpu.memory_space<vmem>>, %arg3: memref<1x3x1x128xf32, #tpu.memory_space<vmem>>, %arg4: memref<3x8x128xf32, #tpu.memory_space<vmem>>) attributes {dimension_semantics = [#tpu.dimension_semantics<parallel>], iteration_bounds = array<i64: 2>, scalar_prefetch = 0 : i64, scratch_operands = 0 : i64, tpu.core_type = #tpu.core_type<tc>, window_params = [{transform_indices = @transform_0, window_bounds = array<i64: 3, 8, 128>}, {transform_indices = @transform_1, window_bounds = array<i64: 1, 3, 1, 128>}, {transform_indices = @transform_2, window_bounds = array<i64: 1, 3, 1, 128>}, {transform_indices = @transform_3, window_bounds = array<i64: 3, 8, 128>}]} {
    %c0 = arith.constant 0 : index
    %c0_0 = arith.constant 0 : index
    %c0_1 = arith.constant 0 : index
    %0 = vector.load %arg1[%c0, %c0_0, %c0_1] : memref<3x8x128xf32, #tpu.memory_space<vmem>>, vector<3x8x128xf32>
    %c0_2 = arith.constant 0 : index
    %c0_3 = arith.constant 0 : index
    %c0_4 = arith.constant 0 : index
    %c0_5 = arith.constant 0 : index
    %1 = vector.load %arg2[%c0_2, %c0_3, %c0_4, %c0_5] : memref<1x3x1x128xf32, #tpu.memory_space<vmem>>, vector<1x3x1x128xf32>
    %2 = vector.shape_cast %1 : vector<1x3x1x128xf32> to vector<3x1x128xf32>
    %c0_6 = arith.constant 0 : index
    %c0_7 = arith.constant 0 : index
    %c0_8 = arith.constant 0 : index
    %c0_9 = arith.constant 0 : index
    %3 = vector.load %arg3[%c0_6, %c0_7, %c0_8, %c0_9] : memref<1x3x1x128xf32, #tpu.memory_space<vmem>>, vector<1x3x1x128xf32>
    %4 = vector.shape_cast %3 : vector<1x3x1x128xf32> to vector<3x1x128xf32>
    %5 = tpu.iota {dimensions = array<i32: 1>} : vector<1x128xi32>
    %c0_i32 = arith.constant 0 : i32
    %6 = vector.broadcast %c0_i32 : i32 to vector<1x128xi32>
    %7 = arith.cmpi sgt, %5, %6 : vector<1x128xi32>
    %8 = arith.extui %7 : vector<1x128xi1> to vector<1x128xi32>
    %9 = arith.sitofp %8 : vector<1x128xi32> to vector<1x128xf32>
    %c127_i32 = arith.constant 127 : i32
    %10 = vector.broadcast %c127_i32 : i32 to vector<1x128xi32>
    %11 = arith.cmpi slt, %5, %10 : vector<1x128xi32>
    %12 = arith.extui %11 : vector<1x128xi1> to vector<1x128xi32>
    %13 = arith.sitofp %12 : vector<1x128xi32> to vector<1x128xf32>
    %c1_i32 = arith.constant 1 : i32
    %14 = tpu.dynamic_rotate %0 by %c1_i32 dim 2 : vector<3x8x128xf32>, i32 -> vector<3x8x128xf32>
    %15 = vector.shape_cast %9 : vector<1x128xf32> to vector<1x1x128xf32>
    %16 = vector.broadcast %15 : vector<1x1x128xf32> to vector<3x8x128xf32>
    %17 = arith.mulf %14, %16 : vector<3x8x128xf32>
    %c127_i32_10 = arith.constant 127 : i32
    %18 = tpu.dynamic_rotate %0 by %c127_i32_10 dim 2 : vector<3x8x128xf32>, i32 -> vector<3x8x128xf32>
    %19 = vector.shape_cast %13 : vector<1x128xf32> to vector<1x1x128xf32>
    %20 = vector.broadcast %19 : vector<1x1x128xf32> to vector<3x8x128xf32>
    %21 = arith.mulf %18, %20 : vector<3x8x128xf32>
    %cst = arith.constant 5.000000e-01 : f32
    %22 = vector.broadcast %cst : f32 to vector<3x8x128xf32>
    %23 = arith.mulf %22, %0 : vector<3x8x128xf32>
    %24 = arith.addf %17, %21 : vector<3x8x128xf32>
    %cst_11 = arith.constant 2.500000e-01 : f32
    %25 = vector.broadcast %cst_11 : f32 to vector<3x8x128xf32>
    %26 = arith.mulf %25, %24 : vector<3x8x128xf32>
    %27 = arith.addf %23, %26 : vector<3x8x128xf32>
    %c1_i32_12 = arith.constant 1 : i32
    %28 = tpu.dynamic_rotate %2 by %c1_i32_12 dim 2 : vector<3x1x128xf32>, i32 -> vector<3x1x128xf32>
    %29 = vector.shape_cast %9 : vector<1x128xf32> to vector<1x1x128xf32>
    %30 = vector.broadcast %29 : vector<1x1x128xf32> to vector<3x1x128xf32>
    %31 = arith.mulf %28, %30 : vector<3x1x128xf32>
    %c127_i32_13 = arith.constant 127 : i32
    %32 = tpu.dynamic_rotate %2 by %c127_i32_13 dim 2 : vector<3x1x128xf32>, i32 -> vector<3x1x128xf32>
    %33 = vector.shape_cast %13 : vector<1x128xf32> to vector<1x1x128xf32>
    %34 = vector.broadcast %33 : vector<1x1x128xf32> to vector<3x1x128xf32>
    %35 = arith.mulf %32, %34 : vector<3x1x128xf32>
    %cst_14 = arith.constant 5.000000e-01 : f32
    %36 = vector.broadcast %cst_14 : f32 to vector<3x1x128xf32>
    %37 = arith.mulf %36, %2 : vector<3x1x128xf32>
    %38 = arith.addf %31, %35 : vector<3x1x128xf32>
    %cst_15 = arith.constant 2.500000e-01 : f32
    %39 = vector.broadcast %cst_15 : f32 to vector<3x1x128xf32>
    %40 = arith.mulf %39, %38 : vector<3x1x128xf32>
    %41 = arith.addf %37, %40 : vector<3x1x128xf32>
    %c1_i32_16 = arith.constant 1 : i32
    %42 = tpu.dynamic_rotate %4 by %c1_i32_16 dim 2 : vector<3x1x128xf32>, i32 -> vector<3x1x128xf32>
    %43 = vector.shape_cast %9 : vector<1x128xf32> to vector<1x1x128xf32>
    %44 = vector.broadcast %43 : vector<1x1x128xf32> to vector<3x1x128xf32>
    %45 = arith.mulf %42, %44 : vector<3x1x128xf32>
    %c127_i32_17 = arith.constant 127 : i32
    %46 = tpu.dynamic_rotate %4 by %c127_i32_17 dim 2 : vector<3x1x128xf32>, i32 -> vector<3x1x128xf32>
    %47 = vector.shape_cast %13 : vector<1x128xf32> to vector<1x1x128xf32>
    %48 = vector.broadcast %47 : vector<1x1x128xf32> to vector<3x1x128xf32>
    %49 = arith.mulf %46, %48 : vector<3x1x128xf32>
    %cst_18 = arith.constant 5.000000e-01 : f32
    %50 = vector.broadcast %cst_18 : f32 to vector<3x1x128xf32>
    %51 = arith.mulf %50, %4 : vector<3x1x128xf32>
    %52 = arith.addf %45, %49 : vector<3x1x128xf32>
    %cst_19 = arith.constant 2.500000e-01 : f32
    %53 = vector.broadcast %cst_19 : f32 to vector<3x1x128xf32>
    %54 = arith.mulf %53, %52 : vector<3x1x128xf32>
    %55 = arith.addf %51, %54 : vector<3x1x128xf32>
    %c1_i32_20 = arith.constant 1 : i32
    %56 = tpu.dynamic_rotate %27 by %c1_i32_20 dim 1 : vector<3x8x128xf32>, i32 -> vector<3x8x128xf32>
    %c7_i32 = arith.constant 7 : i32
    %57 = tpu.dynamic_rotate %27 by %c7_i32 dim 1 : vector<3x8x128xf32>, i32 -> vector<3x8x128xf32>
    %cst_21 = arith.constant 5.000000e-01 : f32
    %58 = vector.broadcast %cst_21 : f32 to vector<3x8x128xf32>
    %59 = arith.mulf %58, %27 : vector<3x8x128xf32>
    %60 = arith.addf %56, %57 : vector<3x8x128xf32>
    %cst_22 = arith.constant 2.500000e-01 : f32
    %61 = vector.broadcast %cst_22 : f32 to vector<3x8x128xf32>
    %62 = arith.mulf %61, %60 : vector<3x8x128xf32>
    %63 = arith.addf %59, %62 : vector<3x8x128xf32>
    %c0_23 = arith.constant 0 : index
    %c0_24 = arith.constant 0 : index
    %c0_25 = arith.constant 0 : index
    %64 = vector.load %arg4[%c0_23, %c0_24, %c0_25] : memref<3x8x128xf32, #tpu.memory_space<vmem>>, vector<3x8x128xf32>
    tpu.vector_store %arg4[%c0_23, %c0_24, %c0_25], %63 {strides = array<i32>} : memref<3x8x128xf32, #tpu.memory_space<vmem>>, vector<3x8x128xf32>,
    %65 = vector.extract_strided_slice %27 {offsets = [0, 0, 0], sizes = [3, 1, 128], strides = [1, 1, 1]} : vector<3x8x128xf32> to vector<3x1x128xf32>
    %cst_26 = arith.constant 5.000000e-01 : f32
    %66 = vector.broadcast %cst_26 : f32 to vector<3x1x128xf32>
    %67 = arith.mulf %66, %65 : vector<3x1x128xf32>
    %68 = vector.extract_strided_slice %27 {offsets = [0, 1, 0], sizes = [3, 1, 128], strides = [1, 1, 1]} : vector<3x8x128xf32> to vector<3x1x128xf32>
    %69 = arith.addf %41, %68 : vector<3x1x128xf32>
    %cst_27 = arith.constant 2.500000e-01 : f32
    %70 = vector.broadcast %cst_27 : f32 to vector<3x1x128xf32>
    %71 = arith.mulf %70, %69 : vector<3x1x128xf32>
    %72 = arith.addf %67, %71 : vector<3x1x128xf32>
    %73 = vector.extract_strided_slice %27 {offsets = [0, 7, 0], sizes = [3, 1, 128], strides = [1, 1, 1]} : vector<3x8x128xf32> to vector<3x1x128xf32>
    %cst_28 = arith.constant 5.000000e-01 : f32
    %74 = vector.broadcast %cst_28 : f32 to vector<3x1x128xf32>
    %75 = arith.mulf %74, %73 : vector<3x1x128xf32>
    %76 = vector.extract_strided_slice %27 {offsets = [0, 6, 0], sizes = [3, 1, 128], strides = [1, 1, 1]} : vector<3x8x128xf32> to vector<3x1x128xf32>
    %77 = arith.addf %76, %55 : vector<3x1x128xf32>
    %cst_29 = arith.constant 2.500000e-01 : f32
    %78 = vector.broadcast %cst_29 : f32 to vector<3x1x128xf32>
    %79 = arith.mulf %78, %77 : vector<3x1x128xf32>
    %80 = arith.addf %75, %79 : vector<3x1x128xf32>
    %c0_30 = arith.constant 0 : index
    %c0_31 = arith.constant 0 : index
    %c0_32 = arith.constant 0 : index
    %81 = vector.load %arg4[%c0_30, %c0_31, %c0_32] : memref<3x8x128xf32, #tpu.memory_space<vmem>>, vector<3x1x128xf32>
    tpu.vector_store %arg4[%c0_30, %c0_31, %c0_32], %72 {strides = array<i32>} : memref<3x8x128xf32, #tpu.memory_space<vmem>>, vector<3x1x128xf32>,
    %c0_33 = arith.constant 0 : index
    %c7 = arith.constant 7 : index
    %c0_34 = arith.constant 0 : index
    %82 = vector.load %arg4[%c0_33, %c7, %c0_34] : memref<3x8x128xf32, #tpu.memory_space<vmem>>, vector<3x1x128xf32>
    tpu.vector_store %arg4[%c0_33, %c7, %c0_34], %80 {strides = array<i32>} : memref<3x8x128xf32, #tpu.memory_space<vmem>>, vector<3x1x128xf32>,
    return
  }
  func.func @transform_0(%arg0: i32) -> (i32, i32, i32) {
    %c0_i32 = arith.constant 0 : i32
    %c0_i32_0 = arith.constant 0 : i32
    %c0_i32_1 = arith.constant 0 : i32
    return %c0_i32, %arg0, %c0_i32_0 : i32, i32, i32
  }
  func.func @transform_1(%arg0: i32) -> (i32, i32, i32, i32) {
    %c0_i32 = arith.constant 0 : i32
    %c0_i32_0 = arith.constant 0 : i32
    %c0_i32_1 = arith.constant 0 : i32
    %c0_i32_2 = arith.constant 0 : i32
    return %arg0, %c0_i32, %c0_i32_0, %c0_i32_1 : i32, i32, i32, i32
  }
  func.func @transform_2(%arg0: i32) -> (i32, i32, i32, i32) {
    %c0_i32 = arith.constant 0 : i32
    %c0_i32_0 = arith.constant 0 : i32
    %c0_i32_1 = arith.constant 0 : i32
    %c0_i32_2 = arith.constant 0 : i32
    return %arg0, %c0_i32, %c0_i32_0, %c0_i32_1 : i32, i32, i32, i32
  }
  func.func @transform_3(%arg0: i32) -> (i32, i32, i32) {
    %c0_i32 = arith.constant 0 : i32
    %c0_i32_0 = arith.constant 0 : i32
    %c0_i32_1 = arith.constant 0 : i32
    return %c0_i32, %arg0, %c0_i32_0 : i32, i32, i32
  }
}

</mosaic_0001>

<bundles_post_ra>
// kernel: tpu_custom_call.1
= control target key start
LH: loop header
LB: loop body
LE: loop exit
PB: predicated region body
PF: predicated region fallthrough
CT: control target
= control target key end

     0   :  { %s1241_s0 = inlined_call_operand.hbm [shape: f32[3,16,128], index: 0, kind: input, shape index: {}]   ;;  %s1242_s1 = inlined_call_operand.hbm [shape: f32[2,3,1,128], index: 1, kind: input, shape index: {}]   ;;  %s1243_s2 = inlined_call_operand.hbm [shape: f32[2,3,1,128], index: 2, kind: input, shape index: {}]   ;;  %s1244_s3 = inlined_call_operand.hbm [shape: f32[3,16,128], index: 3, kind: output, shape index: {}]  }
   0x1   :  { %1251 = sst [smem:[#allocation13_spill]] %s1241_s0 }
   0x2   :  { %1252 = sst [smem:[#allocation14_spill]] %s1242_s1 }
   0x3   :  { %8 = vsyncpa [#allocation3], 0 }
   0x4   :  { %10 = vsyncpa [#allocation3 + $0x1], 0 }
   0x5   :  { %11 = vsyncpa [#allocation6], 0 }
   0x6   :  { %13 = vsyncpa [#allocation6 + $0x1], 0 }
   0x7   :  { %14 = vsyncpa [#allocation4], 0 }
   0x8   :  { %16 = vsyncpa [#allocation4 + $0x1], 0  ;;  %s901_s12 = smov 0   ;;  %s903_s13 = smov 0  }
   0x9   :  { %s905_s14 = smov 0   ;;  %s907_s15 = smov 0  }
   0xa LB: > { %s922_s16 = sadd.s32 4294967295, %s863_s15   ;;  %s624_s17 = sadd.s32 4294967294, %s863_s15   ;;  %s863_s15 = sphi %s907_s15, %s1276_s15   ;;  %s859_s14 = sphi %s905_s14, %s1275_s14   ;;  %s855_s13 = sphi %s903_s13, %s1274_s13   ;;  %s851_s12 = sphi %s901_s12, %s1273_s12  }
   0xb   : > { %s926_s18 = sadd.s32 1, %s863_s15   ;;  %s29_s19 = sadd.s32 1, %s859_s14 }
   0xc   : > { %s26_s20 = ssub.s32 %s863_s15, %s926_s18  ;;  %p36_p0 = scmp.ne.s32.totalorder %s859_s14, %s855_s13 }
   0xd   : > { %p27_p1 = scmp.eq.s32.totalorder %s26_s20, 0  ;;  %p37_p2 = scmp.eq.s32.totalorder %s863_s15, 0 }
   0xe   : > { %p42_p3 = scmp.ne.s32.totalorder %s855_s13, %s851_s12  ;;  %p43_p4 = scmp.eq.s32.totalorder %s922_s16, 0 }
   0xf   : > { %s938_s21 = scalar_select %p27_p1, %s859_s14, %s29_s19  }
  0x10   : > { %p38_p5 = por %p37_p2, %p36_p0  ;;  %p940_p6 = por %p43_p4, %p42_p3 }
  0x11   : > { %1253 = sst [smem:[#allocation12_spill]] %s938_s21  ;;  %p118_p7 = scmp.eq.s32.totalorder %s922_s16, 1 }
  0x12   : > { %s1254_s22 = scalar_select %p940_p6, 1, 0 }
  0x13   : > { %p124_p8 = scmp.eq.s32.totalorder %s624_s17, 1  ;;  %p665_p10 = scmp.lt.s32.totalorder %s863_s15, 2 }
  0x14   : > { %p947_p11 = por %p118_p7, %p36_p0  ;;  %s956_s25 = sand.u32 1, %s859_s14  }
  0x15   : > { %p951_p12 = por %p124_p8, %p42_p3  ;;  %p958_p13 = pnand %p665_p10, %p38_p5 }
  0x16   : > { %s1255_s23 = scalar_select %p947_p11, 1, 0 }
  0x17   : > { %s1256_s24 = scalar_select %p951_p12, 1, 0 }
  0x18   : > { %s164_s27 = sand.u32 1, %s863_s15   ;;  %s1247_s28 = smul.u32 3, %s956_s25 }
  0x19   : > { %s1250_s29 = smul.u32 48, %s863_s15  ;;  %s1258_s1 = sld [smem:[#allocation14_spill]] }
  0x1a   : > { %s168_s30 = scalar_lea.vmem [#allocation5], %s1247_s28  ;;  %s977_s8 = scalar_lea.sflag [#allocation6], %s164_s27 }
  0x1b   : > { %s175_s4 = sshll.u32 %s168_s30, 4  ;;  %p983_p2 = pneg %p958_p13  ;;  %s974_s4 = int_to_ptr.vmem [resolvable:$true] %s175_s4 }
  0x1f   : > { %s972_s7 = scalar_lea.hbm %s1258_s1, %s1250_s29  ;;  %s716_s19 = scalar_lea.hbm %s1258_s1, 96 }
  0x20   : > { %s711_s9 = scalar_lea.hbm %s972_s7, 48  ;;  %p717_p5 = scmp.lt.s32.totalorder %s972_s7, %s1258_s1 }
  0x21   : > { %p712_p1 = scmp.ne.s32.totalorder %s972_s7, %s711_s9  ;;  %p718_p7 = scmp.lt.s32.totalorder %s716_s19, %s711_s9 }
  0x23   : > { %p714_p3 = pnand %p983_p2, %p712_p1  ;;  %p719_p8 = por %p718_p7, %p717_p5 }
  0x25   : > { %p715_p4 = pneg %p714_p3 }
  0x27   : > { %p720_p10 = pnand %p719_p8, %p715_p4 }
  0x29   : > { %723 = shalt.err (!%p720_p10)
}
  0x2a   : > { %s724_s27 = scalar_lea.vmem %s974_s4, 48  ;;  %s865_s5 = smov [#allocation5]  }
  0x2b   : > { %p725_p9 = scmp.ne.s32.totalorder %s974_s4, %s724_s27  ;;  %s729_s6 = sshll.u32 %s865_s5, 4  ;;  %s730_s6 = int_to_ptr.vmem [resolvable:$false] %s729_s6 }
  0x2c   : > { %s731_s11 = scalar_lea.vmem %s730_s6, 96  ;;  %p732_p0 = scmp.lt.s32.totalorder %s974_s4, %s730_s6 }
  0x2d   : > { %p727_p1 = pnand %p725_p9, %p983_p2  ;;  %p733_p12 = scmp.lt.s32.totalorder %s731_s11, %s724_s27 }
  0x2f   : > { %p728_p3 = pneg %p727_p1  ;;  %p734_p11 = por %p733_p12, %p732_p0 }
  0x31   : > { %p735_p6 = pnand %p734_p11, %p728_p3 }
  0x33   : > { %738 = shalt.err (!%p735_p6)
}
  0x34   : > { %s1248_s9 = smov 16   ;;  %s1249_s17 = smov 1  }
  0x35   : > { %657 = dma.hbm_to_vmem [thread:$0]  (!%p958_p13), %s972_s7, 48, %s974_s4, %s977_s8, %s1248_s9, %s1248_s9, %s1249_s17  }
  0x36   : > { %p204_p9 = scmp.lt.s32.totalorder %s863_s15, 3  ;;  %s636_s19 = smul.u32 24, %s956_s25 }
  0x37   : > { %s627_s20 = sshll.u32 %s863_s15, 7  ;;  %p1260_p6 = scmp.ge.s32.totalorder %s863_s15, 1 }
  0x38   : > { %s1262_s0 = sld [smem:[#allocation13_spill]]  ;;  %s148_s11 = scalar_lea.vmem [#allocation2], %s636_s19 }
  0x39   : > { %p1014_p11 = pnand %p1260_p6, %p204_p9  ;;  %s154_s28 = sshll.u32 %s148_s11, 4  ;;  %s1023_s28 = int_to_ptr.vmem [resolvable:$true] %s154_s28 }
  0x3a   : > { %s145_s4 = scalar_lea.sflag [#allocation3], %s956_s25 }
  0x3b   : > { %s1261_s30 = scalar_select %p1014_p11, 1, 0 }
  0x3e   : > { %s1021_s6 = scalar_lea.hbm %s1262_s0, %s627_s20  ;;  %s744_s29 = scalar_lea.hbm %s1262_s0, 768 }
  0x3f   : > { %s739_s7 = scalar_lea.hbm %s1021_s6, 384  ;;  %p745_p5 = scmp.lt.s32.totalorder %s1021_s6, %s1262_s0 }
  0x40   : > { %p740_p12 = scmp.ne.s32.totalorder %s1021_s6, %s739_s7  ;;  %p746_p7 = scmp.lt.s32.totalorder %s744_s29, %s739_s7 }
  0x42   : > { %p742_p0 = pnand %p740_p12, %p983_p2  ;;  %p747_p8 = por %p746_p7, %p745_p5 }
  0x44   : > { %p743_p4 = pneg %p742_p0 }
  0x46   : > { %p748_p10 = pnand %p747_p8, %p743_p4 }
  0x48   : > { %751 = shalt.err (!%p748_p10)
}
  0x49   : > { %s752_s19 = scalar_lea.vmem %s1023_s28, 384  ;;  %s868_s5 = smov [#allocation2]  }
  0x4a   : > { %p753_p1 = scmp.ne.s32.totalorder %s1023_s28, %s752_s19  ;;  %s757_s9 = sshll.u32 %s868_s5, 4  ;;  %s758_s9 = int_to_ptr.vmem [resolvable:$false] %s757_s9 }
  0x4b   : > { %s759_s17 = scalar_lea.vmem %s758_s9, 768  ;;  %p760_p6 = scmp.lt.s32.totalorder %s1023_s28, %s758_s9 }
  0x4c   : > { %p755_p3 = pnand %p753_p1, %p983_p2  ;;  %p761_p12 = scmp.lt.s32.totalorder %s759_s17, %s752_s19 }
  0x4e   : > { %p756_p9 = pneg %p755_p3  ;;  %p762_p0 = por %p761_p12, %p760_p6 }
  0x50   : > { %p763_p11 = pnand %p762_p0, %p756_p9 }
  0x52   : > { %766 = shalt.err (!%p763_p11)
}
  0x53   : > { %s869_s29 = smov 256   ;;  %s870_s11 = smov 128  }
  0x54   : > { %s871_s7 = smov 8   ;;  %s1263_s27 = smul.u32 48, %s863_s15 }
  0x55   : > { %654 = dma.hbm_to_vmem [thread:$0]  (!%p958_p13), %s1021_s6, 384, %s1023_s28, %s145_s4, %s869_s29, %s870_s11, %s871_s7  }
  0x56   : > { %s1053_s19 = scalar_lea.hbm %s1243_s2, %s1263_s27  ;;  %s1264_s9 = smul.u32 3, %s956_s25 }
  0x57   : > { %s767_s1 = scalar_lea.hbm %s1053_s19, 48  ;;  %s772_s6 = scalar_lea.hbm %s1243_s2, 96 }
  0x58   : > { %s189_s17 = scalar_lea.vmem [#allocation7], %s1264_s9  ;;  %p768_p11 = scmp.ne.s32.totalorder %s1053_s19, %s767_s1 }
  0x59   : > { %s196_s0 = sshll.u32 %s189_s17, 4  ;;  %p773_p7 = scmp.lt.s32.totalorder %s1053_s19, %s1243_s2  ;;  %s197_s0 = int_to_ptr.vmem [resolvable:$true] %s196_s0 }
  0x5a   : > { %p770_p4 = pnand %p768_p11, %p983_p2  ;;  %p774_p8 = scmp.lt.s32.totalorder %s772_s6, %s767_s1 }
  0x5c   : > { %p771_p5 = pneg %p770_p4  ;;  %p775_p10 = por %p774_p8, %p773_p7 }
  0x5e   : > { %p776_p1 = pnand %p775_p10, %p771_p5 }
  0x60   : > { %779 = shalt.err (!%p776_p1)
}
  0x61   : > { %s780_s25 = scalar_lea.vmem %s197_s0, 48  ;;  %s872_s11 = smov [#allocation7]  }
  0x62   : > { %p781_p3 = scmp.ne.s32.totalorder %s197_s0, %s780_s25  ;;  %s785_s7 = sshll.u32 %s872_s11, 4  ;;  %s786_s7 = int_to_ptr.vmem [resolvable:$false] %s785_s7 }
  0x63   : > { %s787_s27 = scalar_lea.vmem %s786_s7, 96  ;;  %p788_p12 = scmp.lt.s32.totalorder %s197_s0, %s786_s7 }
  0x64   : > { %p783_p9 = pnand %p781_p3, %p983_p2  ;;  %p789_p0 = scmp.lt.s32.totalorder %s787_s27, %s780_s25 }
  0x66   : > { %p784_p6 = pneg %p783_p9  ;;  %p790_p11 = por %p789_p0, %p788_p12 }
  0x68   : > { %p791_p4 = pnand %p790_p11, %p784_p6 }
  0x6a   : > { %794 = shalt.err (!%p791_p4)
}
  0x6b   : > { %s1265_s1 = smov 1   ;;  %s1266_s21 = smov 16  }
  0x6c   : > { %660 = dma.hbm_to_vmem [thread:$0]  (!%p958_p13), %s1053_s19, 48, %s197_s0, %s977_s8, %s1266_s21, %s1266_s21, %s1265_s1  }
  0x6d   : > { %p1267_p2 = scmp.ne.s32.totalorder %s1261_s30, 0 }
  0x6e   : > { %s1080_s10 = sand.u32 (!%p1267_p2), 1, %s855_s13   ;;  %p1268_p5 = scmp.ne.s32.totalorder (!%p1267_p2), %s1254_s22, 0 }
  0x6f   : > { %208 = sbr.rel (%p1267_p2) target bundleno = 299 (0x12b), region = 32  ;;  %s211_s5 = scalar_lea.sflag (!%p1267_p2), [#allocation3], %s1080_s10 }
  0x70   : > { %s641_s20 = smul.u32 (!%p1267_p2), 24, %s1080_s10 }
  0x72   : > { %s214_s26 = scalar_lea.vmem (!%p1267_p2), [#allocation2], %s641_s20 }
  0x74   : > { %838 = dma.done.wait (%p1268_p5), %s211_s5, 384  }
  0x75   : > { %840 = vsyncadd (%p1268_p5), %s211_s5, 4294966912  ;;  %s219_s0 = sand.u32 1, %s922_s16   ;;  %s642_s8 = smul.u32 3, %s1080_s10 }
  0x76   : > { %s220_s30 = scalar_lea.sflag [#allocation6], %s219_s0 }
  0x77   : > { %s223_s19 = scalar_lea.vmem [#allocation5], %s642_s8 }
  0x78   : > { %842 = dma.done.wait (%p1268_p5), %s220_s30, 96  }
  0x79   : > { %844 = vsyncadd (%p1268_p5), %s220_s30, 4294967200  ;;  %v267_v0 = vld [vmem:[%s214_s26 + $0x10] sm:$0xff]  ;;  %v265_v1 = vld [vmem:[%s214_s26] sm:$0xff]  ;;  %s873_s9 = smov 1   ;;  %s874_s17 = smov 127   ;;  %v274_v9 = vlaneseq  ;;  %v875_v13 = vmov 0.0  }
  0x7a   : > { %286 = vrot.lane.b32.xlu1 %v267_v0, %s873_s9  ;;  %282 = vrot.lane.b32.xlu0 %v265_v1, %s873_s9  ;;  %v266_v2 = vld [vmem:[%s214_s26 + $0x8] sm:$0xff]  ;;  %s232_s28 = scalar_lea.vmem [#allocation7], %s642_s8  ;;  %v1108_v6 = vld [vmem:[%s223_s19 + $0x1] sm:$0x1]  ;;  %v300_v20 = vmul.f32 0.5, %v265_v1  ;;  %v302_v29 = vmul.f32 0.5, %v267_v0 }
  0x7b   : > { %v1096_v3 = vld [vmem:[%s232_s28 + $0x1] sm:$0x1]  ;;  %v1098_v4 = vld [vmem:[%s232_s28] sm:$0x1]  ;;  %v1102_v5 = vld [vmem:[%s232_s28 + $0x2] sm:$0x1] }
  0x7c   : > { %v1110_v7 = vld [vmem:[%s223_s19] sm:$0x1]  ;;  %v1114_v8 = vld [vmem:[%s223_s19 + $0x2] sm:$0x1]  ;;  %v275_v10 = vand.u32 127, %v274_v9  ;;  %v301_v32 = vmul.f32 0.5, %v266_v2 }
  0x7d   : > { %v876_v30 = vmov 1966171168   ;;  %v400_v43 = vshrl.u32 %v274_v9, 7  ;;  %v361_v58 = vmul.f32 0.5, %v1096_v3  ;;  %v360_v59 = vmul.f32 0.5, %v1098_v4  ;;  %s1147_s22 = scalar_lea.vmem [#allocation8], %s641_s20 }
  0x7e   : > { %291 = vrot.lane.b32.xlu1 %v265_v1, %s874_s17  ;;  %284 = vrot.lane.b32.xlu0 %v266_v2, %s873_s9  ;;  %vm276_vm0 = vcmp.gt.s32.totalorder %v275_v10, 0  ;;  %vm279_vm1 = vcmp.lt.s32.totalorder %v275_v10, 127  ;;  %v397_v31 = vunpack.c.l.s4 %v876_v30  ;;  %s633_s6 = sshll.u32 %s922_s16, 7  ;;  %s508_s4 = sshll.u32 %s1147_s22, 4  ;;  %s1195_s4 = int_to_ptr.vmem [resolvable:$true] %s508_s4 }
  0x7f   : > { %v1120_v14 = vsel %vm276_vm0, 1.0, %v875_v13  ;;  %v1122_v15 = vsel %vm279_vm1, 1.0, %v875_v13  ;;  %v458_v13 = vsub.s32 0, %v400_v43  ;;  %s1192_s11 = scalar_lea.hbm %s1244_s3, %s633_s6  ;;  %s496_s16 = scalar_lea.sflag [#allocation4], %s1080_s10 }
  0x80   : > { %v398_v42 = vunpack.c.0.s8 %v397_v31  ;;  %s795_s7 = scalar_lea.vmem %s1195_s4, 384  ;;  %p1269_p7 = scmp.ne.s32.totalorder %s1255_s23, 0 }
  0x81   : > { %p796_p13 = scmp.ne.s32.totalorder %s1195_s4, %s795_s7  ;;  %s877_s27 = smov [#allocation8]  }
  0x82   : > { %295 = vrot.lane.b32.xlu1 %v267_v0, %s874_s17  ;;  %293 = vrot.lane.b32.xlu0 %v266_v2, %s874_s17  ;;  %v1137_v56 = vsub.s32 %v398_v42, %v400_v43  ;;  %v332_v43 = vmul.f32 0.5, %v1114_v8  ;;  %s799_s1 = sshll.u32 %s877_s27, 4  ;;  %s800_s1 = int_to_ptr.vmem [resolvable:$false] %s799_s1 }
  0x83   : > { %p797_p8 = pnand %p796_p13, %p1269_p7  ;;  %s801_s21 = scalar_lea.vmem %s800_s1, 768 }
  0x84   : > { %p802_p1 = scmp.lt.s32.totalorder %s1195_s4, %s800_s1  ;;  %p803_p3 = scmp.lt.s32.totalorder %s801_s21, %s795_s7 }
  0x85   : > { %p798_p10 = pneg %p797_p8 }
  0x86   : > { %344 = vrot.lane.b32.xlu1 %v1096_v3, %s873_s9  ;;  %342 = vrot.lane.b32.xlu0 %v1098_v4, %s873_s9  ;;  %p804_p9 = por %p803_p3, %p802_p1 }
  0x88   : > { %p805_p6 = pnand %p804_p9, %p798_p10 }
  0x8a   : > { %351 = vrot.lane.b32.xlu1 %v1098_v4, %s874_s17  ;;  %346 = vrot.lane.b32.xlu0 %v1102_v5, %s873_s9 }
  0x8e   : > { %355 = vrot.lane.b32.xlu1 %v1102_v5, %s874_s17  ;;  %353 = vrot.lane.b32.xlu0 %v1096_v3, %s874_s17 }
  0x92   : > { %314 = vrot.lane.b32.xlu1 %v1108_v6, %s873_s9  ;;  %312 = vrot.lane.b32.xlu0 %v1110_v7, %s873_s9 }
  0x96   : > { %321 = vrot.lane.b32.xlu1 %v1110_v7, %s874_s17  ;;  %316 = vrot.lane.b32.xlu0 %v1114_v8, %s873_s9 }
  0x9a   : > { %325 = vrot.lane.b32.xlu1 %v1114_v8, %s874_s17  ;;  %323 = vrot.lane.b32.xlu0 %v1108_v6, %s874_s17 }
  0xec   : > { %v287_v11 = vpop.permute.xlu1 %286  ;;  %v283_v12 = vpop.permute.xlu0 %282 }
  0xed   : > { %v288_v18 = vmul.f32 %v1120_v14, %v283_v12  ;;  %v290_v22 = vmul.f32 %v1120_v14, %v287_v11 }
  0xf0   : > { %v292_v16 = vpop.permute.xlu1 %291  ;;  %v285_v17 = vpop.permute.xlu0 %284 }
  0xf1   : > { %v297_v19 = vmul.f32 %v1122_v15, %v292_v16  ;;  %v289_v26 = vmul.f32 %v1120_v14, %v285_v17 }
  0xf3   : > { %v303_v21 = vadd.f32 %v297_v19, %v288_v18  ;;  %v362_v18 = vmul.f32 0.5, %v1102_v5 }
  0xf4   : > { %v296_v23 = vpop.permute.xlu1 %295  ;;  %v294_v24 = vpop.permute.xlu0 %293 }
  0xf5   : > { %v306_v25 = vmul.f32 0.25, %v303_v21  ;;  %v299_v27 = vmul.f32 %v1122_v15, %v296_v23  ;;  %v298_v28 = vmul.f32 %v1122_v15, %v294_v24 }
  0xf7   : > { %v309_v33 = vadd.f32 %v306_v25, %v300_v20  ;;  %v305_v34 = vadd.f32 %v299_v27, %v290_v22  ;;  %v304_v35 = vadd.f32 %v298_v28, %v289_v26 }
  0xf8   : > { %v345_v36 = vpop.permute.xlu1 %344  ;;  %v343_v37 = vpop.permute.xlu0 %342 }
  0xf9   : > { %v372_v38 = vrot.slane %v309_v33, 7  ;;  %v375_v39 = vrot.slane %v309_v33, 1  ;;  %v308_v40 = vmul.f32 0.25, %v305_v34  ;;  %v307_v41 = vmul.f32 0.25, %v304_v35 }
  0xfa   : > { %v1132_v48 = vmul.f32 0.5, %v309_v33  ;;  %v348_v55 = vmul.f32 %v1120_v14, %v343_v37  ;;  %v349_v63 = vmul.f32 %v1120_v14, %v345_v36  ;;  %v402_v26 = vrot.slane %v309_v33, %v1137_v56 }
  0xfb   : > { %v381_v44 = vadd.f32 %v375_v39, %v372_v38  ;;  %v311_v45 = vadd.f32 %v308_v40, %v302_v29  ;;  %v1130_v46 = vadd.f32 %v307_v41, %v301_v32  ;;  %v330_v40 = vmul.f32 0.5, %v1110_v7 }
  0xfc   : > { %v352_v47 = vpop.permute.xlu1 %351  ;;  %v347_v49 = vpop.permute.xlu0 %346  ;;  %v403_v34 = vcombine.high %v402_v26, %v402_v26 }
  0xfd   : > { %v384_v50 = vmul.f32 0.25, %v381_v44  ;;  %v374_v51 = vrot.slane %v311_v45, 7  ;;  %v377_v52 = vrot.slane %v311_v45, 1  ;;  %v373_v53 = vrot.slane %v1130_v46, 7 }
  0xfe   : > { %v376_v54 = vrot.slane %v1130_v46, 1  ;;  %v357_v57 = vmul.f32 %v1122_v15, %v352_v47  ;;  %v350_v1 = vmul.f32 %v1120_v14, %v347_v49  ;;  %v1150_v3 = vmul.f32 0.5, %v311_v45 }
  0xff   : > { %v383_v60 = vadd.f32 %v377_v52, %v374_v51  ;;  %v387_v61 = vadd.f32 %v384_v50, %v1132_v48  ;;  %v1155_v17 = vmul.f32 0.5, %v1130_v46  ;;  %v432_v42 = vrot.slane %v311_v45, %v1137_v56 }
 0x100   : > { %v382_v62 = vadd.f32 %v376_v54, %v373_v53  ;;  %v363_v0 = vadd.f32 %v357_v57, %v348_v55  ;;  %v356_v2 = vpop.permute.xlu1 %355  ;;  %v354_v9 = vpop.permute.xlu0 %353  ;;  %v410_v50 = vrot.slane %v403_v34, %v1137_v56  ;;  %v417_v53 = vrot.slane %v1130_v46, %v1137_v56 }
 0x101   : > { %v386_v10 = vmul.f32 0.25, %v383_v60  ;;  %390 = vst [vmem:[%s1147_s22] sm:$0xff] %v387_v61  ;;  %v359_v4 = vmul.f32 %v1122_v15, %v356_v2  ;;  %v358_v11 = vmul.f32 %v1122_v15, %v354_v9 }
 0x102   : > { %v385_v12 = vmul.f32 0.25, %v382_v62  ;;  %v366_v16 = vmul.f32 0.25, %v363_v0 }
 0x103   : > { %v389_v19 = vadd.f32 %v386_v10, %v1150_v3  ;;  %v365_v20 = vadd.f32 %v359_v4, %v350_v1  ;;  %v364_v21 = vadd.f32 %v358_v11, %v349_v63  ;;  %v418_v1 = vcombine.high %v417_v53, %v417_v53 }
 0x104   : > { %v369_v22 = vadd.f32 %v366_v16, %v360_v59  ;;  %v388_v23 = vadd.f32 %v385_v12, %v1155_v17  ;;  %v315_v24 = vpop.permute.xlu1 %314  ;;  %v313_v25 = vpop.permute.xlu0 %312  ;;  %v433_v59 = vcombine.high %v432_v42, %v432_v42 }
 0x105   : > { %392 = vst [vmem:[%s1147_s22 + $0x10] sm:$0xff] %v389_v19  ;;  %v368_v27 = vmul.f32 0.25, %v365_v20  ;;  %v367_v28 = vmul.f32 0.25, %v364_v21  ;;  %v318_v38 = vmul.f32 %v1120_v14, %v313_v25 }
 0x106   : > { %v459_v29 = vrot.slane %v369_v22, %v458_v13  ;;  %391 = vst [vmem:[%s1147_s22 + $0x8] sm:$0xff] %v388_v23  ;;  %v440_v12 = vrot.slane %v433_v59, %v1137_v56 }
 0x107   : > { %v371_v30 = vadd.f32 %v368_v27, %v362_v18  ;;  %v370_v31 = vadd.f32 %v367_v28, %v361_v58  ;;  %v319_v58 = vmul.f32 %v1120_v14, %v315_v24 }
 0x108   : > { %v471_v32 = vadd.f32 %v459_v29, %v309_v33  ;;  %v322_v5 = vpop.permute.xlu1 %321  ;;  %v317_v35 = vpop.permute.xlu0 %316 }
 0x109   : > { %v467_v36 = vrot.slane %v371_v30, %v458_v13  ;;  %v463_v37 = vrot.slane %v370_v31, %v458_v13  ;;  %v327_v39 = vmul.f32 %v1122_v15, %v322_v5  ;;  %v320_v51 = vmul.f32 %v1120_v14, %v317_v35 }
 0x10a   : > { %v474_v41 = vmul.f32 0.25, %v471_v32  ;;  %v425_v13 = vrot.slane %v418_v1, %v1137_v56 }
 0x10b   : > { %v473_v44 = vadd.f32 %v467_v36, %v311_v45  ;;  %v472_v47 = vadd.f32 %v463_v37, %v1130_v46  ;;  %v333_v33 = vadd.f32 %v327_v39, %v318_v38  ;;  %v331_v46 = vmul.f32 0.5, %v1108_v6 }
 0x10c   : > { %v480_v49 = vrot.slane %v474_v41, 7  ;;  %v326_v52 = vpop.permute.xlu1 %325  ;;  %v324_v7 = vpop.permute.xlu0 %323 }
 0x10d   : > { %v476_v54 = vmul.f32 0.25, %v473_v44  ;;  %v475_v55 = vmul.f32 0.25, %v472_v47  ;;  %v336_v57 = vmul.f32 0.25, %v333_v33  ;;  %v329_v8 = vmul.f32 %v1122_v15, %v326_v52 }
 0x10e   : > { %v486_v45 = vadd.f32 %v480_v49, %v1132_v48  ;;  %v328_v60 = vmul.f32 %v1122_v15, %v324_v7 }
 0x10f   : > { %v482_v61 = vrot.slane %v476_v54, 7  ;;  %v481_v62 = vrot.slane %v475_v55, 7  ;;  %v339_v63 = vadd.f32 %v336_v57, %v330_v40  ;;  %v335_v0 = vadd.f32 %v329_v8, %v320_v51 }
 0x110   : > { %492 = vst [vmem:[%s1147_s22] sm:$0x80] %v486_v45  ;;  %v334_v2 = vadd.f32 %v328_v60, %v319_v58 }
 0x111   : > { %v488_v9 = vadd.f32 %v482_v61, %v1150_v3  ;;  %v487_v14 = vadd.f32 %v481_v62, %v1155_v17  ;;  %v444_v10 = vadd.f32 %v410_v50, %v339_v63  ;;  %v338_v4 = vmul.f32 0.25, %v335_v0 }
 0x112   : > { %v337_v11 = vmul.f32 0.25, %v334_v2 }
 0x113   : > { %494 = vst [vmem:[%s1147_s22 + $0x10] sm:$0x80] %v488_v9  ;;  %493 = vst [vmem:[%s1147_s22 + $0x8] sm:$0x80] %v487_v14  ;;  %v447_v15 = vmul.f32 0.25, %v444_v10  ;;  %v341_v6 = vadd.f32 %v338_v4, %v332_v43 }
 0x114   : > { %v340_v16 = vadd.f32 %v337_v11, %v331_v46 }
 0x115   : > { %v450_v18 = vadd.f32 %v447_v15, %v1132_v48  ;;  %v446_v19 = vadd.f32 %v440_v12, %v341_v6 }
 0x116   : > { %v445_v20 = vadd.f32 %v425_v13, %v340_v16 }
 0x117   : > { %489 = vst [vmem:[%s1147_s22] sm:$0x1] %v450_v18  ;;  %v449_v21 = vmul.f32 0.25, %v446_v19 }
 0x118   : > { %v448_v22 = vmul.f32 0.25, %v445_v20 }
 0x119   : > { %v452_v23 = vadd.f32 %v449_v21, %v1150_v3 }
 0x11a   : > { %v451_v48 = vadd.f32 %v448_v22, %v1155_v17 }
 0x11b   : > { %491 = vst [vmem:[%s1147_s22 + $0x10] sm:$0x1] %v452_v23 }
 0x11c   : > { %490 = vst [vmem:[%s1147_s22 + $0x8] sm:$0x1] %v451_v48 }
 0x11d   : > { %808 = shalt.err (!%p805_p6)
}
 0x11e   : > { %s809_s20 = scalar_lea.hbm %s1192_s11, 384  ;;  %s813_s0 = scalar_lea.hbm %s1244_s3, 768 }
 0x11f   : > { %p810_p12 = scmp.ne.s32.totalorder %s1192_s11, %s809_s20  ;;  %p814_p4 = scmp.lt.s32.totalorder %s1192_s11, %s1244_s3 }
 0x120   : > { %p815_p2 = scmp.lt.s32.totalorder %s813_s0, %s809_s20 }
 0x121   : > { %p811_p0 = pnand %p810_p12, %p1269_p7 }
 0x122   : > { %p816_p5 = por %p815_p2, %p814_p4 }
 0x123   : > { %p812_p11 = pneg %p811_p0 }
 0x125   : > { %p817_p13 = pnand %p816_p5, %p812_p11 }
 0x127   : > { %820 = shalt.err (!%p817_p13)
}
 0x128   : > { %s878_s19 = smov 128   ;;  %s879_s9 = smov 256  }
 0x129   : > { %s880_s17 = smov 8  }
 0x12a   : > { %649 = dma.vmem_to_hbm [thread:$0]  (%p1269_p7), %s1195_s4, 384, %s1192_s11, %s496_s16, %s878_s19, %s879_s9, %s880_s17  }
 0x12b PF: > { %s523_s28 = sand.u32 1, %s851_s12   ;;  %p1270_p8 = scmp.ne.s32.totalorder %s1256_s24, 0 }
 0x12c   : > { %p1271_p10 = scmp.ge.s32.totalorder %s863_s15, 2  ;;  %s524_s22 = scalar_lea.sflag [#allocation4], %s523_s28 }
 0x12e   : > { %p662_p1 = pnand %p1271_p10, %p1270_p8 }
 0x130   : > { %p663_p3 = pneg %p662_p1 }
 0x132   : > { %846 = dma.done.wait (%p663_p3), %s524_s22, 384  }
 0x133   : > { %848 = vsyncadd (%p663_p3), %s524_s22, 4294966912  ;;  %s1272_s6 = sld [smem:[#allocation12_spill]]  ;;  %p19_p9 = scmp.ge.s32.totalorder %s926_s18, 4  }
 0x134   : > { %s1273_s12 = smov %s855_s13  ;;  %s1274_s13 = smov %s859_s14 }
 0x135   : > { %s1276_s15 = smov %s926_s18  ;;  %21 = sbr.rel (!%p19_p9) target bundleno = 10 (0xa), region = 101 }
 0x139   : > { %s1275_s14 = smov %s1272_s6 }
 0x13a   :  { %529 = vsyncpa [#allocation3], 1 }
 0x13b   :  { %531 = vsyncpa [#allocation3 + $0x1], 1 }
 0x13c   :  { %532 = vsyncpa [#allocation6], 1 }
 0x13d   :  { %534 = vsyncpa [#allocation6 + $0x1], 1 }
 0x13e   :  { %535 = vsyncpa [#allocation4], 1 }
 0x13f   :  { %537 = vsyncpa [#allocation4 + $0x1], 1 }

</bundles_post_ra>
